<compile_context>
chip_gen: v5e
topology: v5e:2x2
jax: 0.10.0
libtpu: 0.0.40
codegen_flags: <defaults>
</compile_context>

<pallas_src>
import functools

import jax
import jax.numpy as jnp
import numpy as np
from jax import lax
from jax.experimental import pallas as pl
from jax.experimental.pallas import tpu as pltpu

EPS = 1e-8
CLAMP_MIN = 1e-7
LOG_CLAMP_MIN = float(np.log(CLAMP_MIN))
NEG_INF = -1e30


def _energy_loss_kernel(x0_ref, x1_ref, loss_ref, *, temperature):
    """Single fused block: both views, both row groups of the 2B-row CE."""
    B, C = x0_ref.shape
    x0 = x0_ref[...].astype(jnp.float32)
    x1 = x1_ref[...].astype(jnp.float32)

    # Clamped log-softmax + clamped softmax, one exp pass per view.
    def softmax_parts(x):
        m = jnp.max(x, axis=-1, keepdims=True)
        xm = x - m
        e = jnp.exp(xm)
        s = jnp.sum(e, axis=-1, keepdims=True)
        lp = jnp.maximum(xm - jnp.log(s), LOG_CLAMP_MIN)      # log(clip(softmax))
        p = jnp.clip(e * (1.0 / s), CLAMP_MIN, 1.0)           # clip(softmax)
        return p, lp

    p0, lp0 = softmax_parts(x0)
    p1, lp1 = softmax_parts(x1)

    # Row-wise lane reductions (no diagonal extraction from matmul outputs).
    ent0 = jnp.sum(p0 * lp0, axis=-1, keepdims=True)          # (B,1) sum p log p
    ent1 = jnp.sum(p1 * lp1, axis=-1, keepdims=True)
    tgt0 = jnp.sum(p0 * lp1, axis=-1, keepdims=True)          # diag of ce01
    tgt1 = jnp.sum(p1 * lp0, axis=-1, keepdims=True)          # diag of ce10

    inv_t = 1.0 / (temperature + EPS)
    dn = (((1,), (1,)), ((), ()))                              # 'nc,mc->nm'
    diag = (lax.broadcasted_iota(jnp.int32, (B, B), 0) ==
            lax.broadcasted_iota(jnp.int32, (B, B), 1))

    # One row group = B rows anchored at one view.  Two (B,B) matmuls, fused
    # per-column offset, diagonal mask, and a shared-max logsumexp across both
    # halves -- no concatenation of operands or results.
    # TODO(synk): bf16 operands for the dot_generals (see header note).
    def row_group(p_self, lp_other, lp_self, ent_self, tgt_self):
        off = (1.0 - jnp.transpose(ent_self)) * inv_t          # (1,B) per-column
        za = lax.dot_general(p_self, lp_other, dn,
                             preferred_element_type=jnp.float32) * inv_t + off
        zb = lax.dot_general(p_self, lp_self, dn,
                             preferred_element_type=jnp.float32) * inv_t + off
        zb = jnp.where(diag, jnp.float32(NEG_INF), zb)         # drop self-diag
        m = jnp.maximum(jnp.max(za, axis=-1, keepdims=True),
                        jnp.max(zb, axis=-1, keepdims=True))
        s = (jnp.sum(jnp.exp(za - m), axis=-1, keepdims=True) +
             jnp.sum(jnp.exp(zb - m), axis=-1, keepdims=True))
        lse = jnp.log(s) + m                                   # (B,1)
        z_tgt = (tgt_self - ent_self + 1.0) * inv_t            # (B,1) target logit
        return jnp.sum(lse - z_tgt, axis=0, keepdims=True)     # (1,1)

    total = (row_group(p0, lp1, lp0, ent0, tgt0) +
             row_group(p1, lp0, lp1, ent1, tgt1))

    # CrossEntropyLoss(mean over 2B rows) * T^2
    scale = temperature * temperature / (2.0 * B)
    loss_ref[...] = total * scale


def _vmem_ceiling_bytes():
    """Generation-aware scoped-VMEM ceiling (fraction of physical VMEM)."""
    cap = 64 << 20  # conservative default: v7x physical per-TC VMEM
    try:
        info = pltpu.get_tpu_info()
        for name in ("vmem_capacity_bytes", "vmem_size_bytes", "vmem_bytes"):
            v = getattr(info, name, None)
            if v:
                cap = int(v)
                break
    except Exception:
        pass
    frac = 0.75 if cap <= (64 << 20) else 0.85   # headroom for Mosaic scratch
    return int(cap * frac)


def energy_loss(out0, out1, temperature: float = 1.0):
    """Pallas implementation of EnergyLoss.forward (probability='KL',
    attention=False, visualize=False)."""
    B, C = out0.shape
    assert out1.shape == (B, C)

    kernel = functools.partial(_energy_loss_kernel, temperature=float(temperature))

    # Footprint estimate: input buffers (allow 2x for pipelining), ~10 f32
    # (B,C) temporaries (casts, exp, p, log p, transients), ~10 (B,B) words
    # of logits / exp temporaries / iota mask.
    in_bytes = jnp.dtype(out0.dtype).itemsize
    est = (4 * in_bytes + 10 * 4) * B * C + 10 * 4 * B * B
    vmem_limit = int(min(_vmem_ceiling_bytes(), max(32 << 20, 2 * est)))

    partial = pl.pallas_call(
        kernel,
        grid=(1,),
        in_specs=[
            pl.BlockSpec((B, C), lambda i: (0, 0)),
            pl.BlockSpec((B, C), lambda i: (0, 0)),
        ],
        out_specs=pl.BlockSpec((1, 1), lambda i: (0, 0)),
        out_shape=jax.ShapeDtypeStruct((1, 1), jnp.float32),
        compiler_params=pltpu.CompilerParams(
            dimension_semantics=("arbitrary",),
            vmem_limit_bytes=vmem_limit,
        ),
    )(out0, out1)

    return {"energy_loss": partial[0, 0]}


def energy_loss_ref_np(out0, out1, temperature=1.0, eps=1e-8):
    """Pure-numpy reference reproducing the torch forward exactly."""
    out0 = np.asarray(out0, dtype=np.float64)
    out1 = np.asarray(out1, dtype=np.float64)
    B = out0.shape[0]

    def softmax(x):
        e = np.exp(x - x.max(-1, keepdims=True))
        return e / e.sum(-1, keepdims=True)

    p0 = np.clip(softmax(out0), 1e-7, 1.0)
    p1 = np.clip(softmax(out1), 1e-7, 1.0)
    ent0 = np.einsum("bc,bc->b", p0, np.log(p0))
    ent1 = np.einsum("bc,bc->b", p1, np.log(p1))
    ce00 = np.einsum("nc,mc->nm", p0, np.log(p0))
    ce01 = np.einsum("nc,mc->nm", p0, np.log(p1))
    ce10 = np.einsum("nc,mc->nm", p1, np.log(p0))
    ce11 = np.einsum("nc,mc->nm", p1, np.log(p1))
    l00 = ce00 - ent0 + 1
    l01 = ce01 - ent0 + 1
    l10 = ce10 - ent1 + 1
    l11 = ce11 - ent1 + 1
    offdiag = ~np.eye(B, dtype=bool)
    l00nd = l00[offdiag].reshape(B, B - 1)
    l11nd = l11[offdiag].reshape(B, B - 1)
    logits = np.concatenate(
        [np.concatenate([l01, l00nd], axis=1),
         np.concatenate([l10, l11nd], axis=1)], axis=0) / (temperature + eps)
    mx = logits.max(-1, keepdims=True)
    lse = np.log(np.exp(logits - mx).sum(-1)) + mx[:, 0]
    labels = np.concatenate([np.arange(B), np.arange(B)])
    loss = np.mean(lse - logits[np.arange(2 * B), labels]) * temperature ** 2
    return loss


if __name__ == "__main__":
    key = jax.random.PRNGKey(0)
    k0, k1 = jax.random.split(key)
    B, C = 8, 128  # C multiple of 128 keeps the (B,C) work lane-dense
    out0 = jax.random.normal(k0, (B, C), dtype=jnp.float32)
    out1 = jax.random.normal(k1, (B, C), dtype=jnp.float32)

    result = energy_loss(out0, out1, temperature=1.0)
    loss = jax.block_until_ready(result["energy_loss"])

    ref = energy_loss_ref_np(np.asarray(out0), np.asarray(out1), temperature=1.0)
    np.testing.assert_allclose(np.asarray(loss), ref, rtol=2e-4, atol=2e-5)
    print("KERNEL_OK")
</pallas_src>

<mosaic_0001>
module attributes {stable_mosaic.version = 11 : i64} {
  func.func @_energy_loss_kernel(%arg0: i32, %arg1: memref<8x128xf32, #tpu.memory_space<vmem>>, %arg2: memref<8x128xf32, #tpu.memory_space<vmem>>, %arg3: memref<1x1xf32, #tpu.memory_space<vmem>>) attributes {dimension_semantics = [#tpu.dimension_semantics<arbitrary>], iteration_bounds = array<i64: 1>, scalar_prefetch = 0 : i64, scratch_operands = 0 : i64, tpu.core_type = #tpu.core_type<tc>, window_params = [{pipeline_mode = #tpu.pipeline_mode<synchronous>, transform_indices = @transform_0, window_bounds = array<i64: 8, 128>}, {pipeline_mode = #tpu.pipeline_mode<synchronous>, transform_indices = @transform_1, window_bounds = array<i64: 8, 128>}, {pipeline_mode = #tpu.pipeline_mode<synchronous>, transform_indices = @transform_2, window_bounds = array<i64: 1, 1>}]} {
    %c0 = arith.constant 0 : index
    %c0_0 = arith.constant 0 : index
    %0 = vector.load %arg1[%c0, %c0_0] : memref<8x128xf32, #tpu.memory_space<vmem>>, vector<8x128xf32>
    %c0_1 = arith.constant 0 : index
    %c0_2 = arith.constant 0 : index
    %1 = vector.load %arg2[%c0_1, %c0_2] : memref<8x128xf32, #tpu.memory_space<vmem>>, vector<8x128xf32>
    %cst = arith.constant dense<0xFF800000> : vector<8xf32>
    %2 = vector.multi_reduction <maximumf>, %0, %cst [1] : vector<8x128xf32> to vector<8xf32>
    %3 = vector.shape_cast %2 : vector<8xf32> to vector<8x1xf32>
    %4 = vector.broadcast %3 : vector<8x1xf32> to vector<8x128xf32>
    %5 = arith.subf %0, %4 : vector<8x128xf32>
    %6 = math.exp %5 : vector<8x128xf32>
    %cst_3 = arith.constant dense<0.000000e+00> : vector<8xf32>
    %7 = vector.multi_reduction <add>, %6, %cst_3 [1] : vector<8x128xf32> to vector<8xf32>
    %8 = vector.shape_cast %7 : vector<8xf32> to vector<8x1xf32>
    %9 = math.log %8 : vector<8x1xf32>
    %10 = vector.broadcast %9 : vector<8x1xf32> to vector<8x128xf32>
    %11 = arith.subf %5, %10 : vector<8x128xf32>
    %cst_4 = arith.constant -16.1180954 : f32
    %12 = vector.broadcast %cst_4 : f32 to vector<8x128xf32>
    %13 = arith.maximumf %11, %12 : vector<8x128xf32>
    %cst_5 = arith.constant 1.000000e+00 : f32
    %14 = vector.broadcast %cst_5 : f32 to vector<8x1xf32>
    %15 = arith.divf %14, %8 : vector<8x1xf32>
    %16 = vector.broadcast %15 : vector<8x1xf32> to vector<8x128xf32>
    %17 = arith.mulf %6, %16 : vector<8x128xf32>
    %cst_6 = arith.constant 1.000000e-07 : f32
    %cst_7 = arith.constant 1.000000e+00 : f32
    %18 = vector.broadcast %cst_6 : f32 to vector<8x128xf32>
    %19 = arith.maximumf %18, %17 : vector<8x128xf32>
    %20 = vector.broadcast %cst_7 : f32 to vector<8x128xf32>
    %21 = arith.minimumf %20, %19 : vector<8x128xf32>
    %cst_8 = arith.constant dense<0xFF800000> : vector<8xf32>
    %22 = vector.multi_reduction <maximumf>, %1, %cst_8 [1] : vector<8x128xf32> to vector<8xf32>
    %23 = vector.shape_cast %22 : vector<8xf32> to vector<8x1xf32>
    %24 = vector.broadcast %23 : vector<8x1xf32> to vector<8x128xf32>
    %25 = arith.subf %1, %24 : vector<8x128xf32>
    %26 = math.exp %25 : vector<8x128xf32>
    %cst_9 = arith.constant dense<0.000000e+00> : vector<8xf32>
    %27 = vector.multi_reduction <add>, %26, %cst_9 [1] : vector<8x128xf32> to vector<8xf32>
    %28 = vector.shape_cast %27 : vector<8xf32> to vector<8x1xf32>
    %29 = math.log %28 : vector<8x1xf32>
    %30 = vector.broadcast %29 : vector<8x1xf32> to vector<8x128xf32>
    %31 = arith.subf %25, %30 : vector<8x128xf32>
    %cst_10 = arith.constant -16.1180954 : f32
    %32 = vector.broadcast %cst_10 : f32 to vector<8x128xf32>
    %33 = arith.maximumf %31, %32 : vector<8x128xf32>
    %cst_11 = arith.constant 1.000000e+00 : f32
    %34 = vector.broadcast %cst_11 : f32 to vector<8x1xf32>
    %35 = arith.divf %34, %28 : vector<8x1xf32>
    %36 = vector.broadcast %35 : vector<8x1xf32> to vector<8x128xf32>
    %37 = arith.mulf %26, %36 : vector<8x128xf32>
    %cst_12 = arith.constant 1.000000e-07 : f32
    %cst_13 = arith.constant 1.000000e+00 : f32
    %38 = vector.broadcast %cst_12 : f32 to vector<8x128xf32>
    %39 = arith.maximumf %38, %37 : vector<8x128xf32>
    %40 = vector.broadcast %cst_13 : f32 to vector<8x128xf32>
    %41 = arith.minimumf %40, %39 : vector<8x128xf32>
    %42 = arith.mulf %21, %13 : vector<8x128xf32>
    %cst_14 = arith.constant dense<0.000000e+00> : vector<8xf32>
    %43 = vector.multi_reduction <add>, %42, %cst_14 [1] : vector<8x128xf32> to vector<8xf32>
    %44 = vector.shape_cast %43 : vector<8xf32> to vector<8x1xf32>
    %45 = arith.mulf %41, %33 : vector<8x128xf32>
    %cst_15 = arith.constant dense<0.000000e+00> : vector<8xf32>
    %46 = vector.multi_reduction <add>, %45, %cst_15 [1] : vector<8x128xf32> to vector<8xf32>
    %47 = vector.shape_cast %46 : vector<8xf32> to vector<8x1xf32>
    %48 = arith.mulf %21, %33 : vector<8x128xf32>
    %cst_16 = arith.constant dense<0.000000e+00> : vector<8xf32>
    %49 = vector.multi_reduction <add>, %48, %cst_16 [1] : vector<8x128xf32> to vector<8xf32>
    %50 = vector.shape_cast %49 : vector<8xf32> to vector<8x1xf32>
    %51 = arith.mulf %41, %13 : vector<8x128xf32>
    %cst_17 = arith.constant dense<0.000000e+00> : vector<8xf32>
    %52 = vector.multi_reduction <add>, %51, %cst_17 [1] : vector<8x128xf32> to vector<8xf32>
    %53 = vector.shape_cast %52 : vector<8xf32> to vector<8x1xf32>
    %54 = tpu.iota {dimensions = array<i32: 0>} : vector<8x8xi32>
    %55 = tpu.iota {dimensions = array<i32: 1>} : vector<8x8xi32>
    %56 = arith.cmpi eq, %54, %55 : vector<8x8xi32>
    %57 = tpu.transpose %44, [1, 0] : vector<8x1xf32> -> vector<1x8xf32>
    %cst_18 = arith.constant 1.000000e+00 : f32
    %58 = vector.broadcast %cst_18 : f32 to vector<1x8xf32>
    %59 = arith.subf %58, %57 : vector<1x8xf32>
    %cst_19 = arith.constant 1.000000e+00 : f32
    %60 = vector.broadcast %cst_19 : f32 to vector<1x8xf32>
    %61 = arith.mulf %59, %60 : vector<1x8xf32>
    %cst_20 = arith.constant dense<0.000000e+00> : vector<8x8xf32>
    %62 = tpu.matmul %21, %33, %cst_20 {dimension_numbers = #tpu.dot_dimension_numbers<[1], [1], [0], [0], [0, 0, 1, 0], [], []>} : vector<8x128xf32>, vector<8x128xf32>, vector<8x8xf32> -> vector<8x8xf32>
    %cst_21 = arith.constant 1.000000e+00 : f32
    %63 = vector.broadcast %cst_21 : f32 to vector<8x8xf32>
    %64 = arith.mulf %62, %63 : vector<8x8xf32>
    %65 = vector.broadcast %61 : vector<1x8xf32> to vector<8x8xf32>
    %66 = arith.addf %64, %65 : vector<8x8xf32>
    %cst_22 = arith.constant dense<0.000000e+00> : vector<8x8xf32>
    %67 = tpu.matmul %21, %13, %cst_22 {dimension_numbers = #tpu.dot_dimension_numbers<[1], [1], [0], [0], [0, 0, 1, 0], [], []>} : vector<8x128xf32>, vector<8x128xf32>, vector<8x8xf32> -> vector<8x8xf32>
    %cst_23 = arith.constant 1.000000e+00 : f32
    %68 = vector.broadcast %cst_23 : f32 to vector<8x8xf32>
    %69 = arith.mulf %67, %68 : vector<8x8xf32>
    %70 = vector.broadcast %61 : vector<1x8xf32> to vector<8x8xf32>
    %71 = arith.addf %69, %70 : vector<8x8xf32>
    %cst_24 = arith.constant -1.000000e+30 : f32
    %72 = vector.broadcast %cst_24 : f32 to vector<8x8xf32>
    %73 = arith.select %56, %72, %71 : vector<8x8xi1>, vector<8x8xf32>
    %cst_25 = arith.constant dense<0xFF800000> : vector<8xf32>
    %74 = vector.multi_reduction <maximumf>, %66, %cst_25 [1] : vector<8x8xf32> to vector<8xf32>
    %75 = vector.shape_cast %74 : vector<8xf32> to vector<8x1xf32>
    %cst_26 = arith.constant dense<0xFF800000> : vector<8xf32>
    %76 = vector.multi_reduction <maximumf>, %73, %cst_26 [1] : vector<8x8xf32> to vector<8xf32>
    %77 = vector.shape_cast %76 : vector<8xf32> to vector<8x1xf32>
    %78 = arith.maximumf %75, %77 : vector<8x1xf32>
    %79 = vector.broadcast %78 : vector<8x1xf32> to vector<8x8xf32>
    %80 = arith.subf %66, %79 : vector<8x8xf32>
    %81 = math.exp %80 : vector<8x8xf32>
    %cst_27 = arith.constant dense<0.000000e+00> : vector<8xf32>
    %82 = vector.multi_reduction <add>, %81, %cst_27 [1] : vector<8x8xf32> to vector<8xf32>
    %83 = vector.shape_cast %82 : vector<8xf32> to vector<8x1xf32>
    %84 = vector.broadcast %78 : vector<8x1xf32> to vector<8x8xf32>
    %85 = arith.subf %73, %84 : vector<8x8xf32>
    %86 = math.exp %85 : vector<8x8xf32>
    %cst_28 = arith.constant dense<0.000000e+00> : vector<8xf32>
    %87 = vector.multi_reduction <add>, %86, %cst_28 [1] : vector<8x8xf32> to vector<8xf32>
    %88 = vector.shape_cast %87 : vector<8xf32> to vector<8x1xf32>
    %89 = arith.addf %83, %88 : vector<8x1xf32>
    %90 = math.log %89 : vector<8x1xf32>
    %91 = arith.addf %90, %78 : vector<8x1xf32>
    %92 = arith.subf %50, %44 : vector<8x1xf32>
    %cst_29 = arith.constant 1.000000e+00 : f32
    %93 = vector.broadcast %cst_29 : f32 to vector<8x1xf32>
    %94 = arith.addf %92, %93 : vector<8x1xf32>
    %cst_30 = arith.constant 1.000000e+00 : f32
    %95 = vector.broadcast %cst_30 : f32 to vector<8x1xf32>
    %96 = arith.mulf %94, %95 : vector<8x1xf32>
    %97 = arith.subf %91, %96 : vector<8x1xf32>
    %cst_31 = arith.constant dense<0.000000e+00> : vector<1xf32>
    %98 = vector.multi_reduction <add>, %97, %cst_31 [0] : vector<8x1xf32> to vector<1xf32>
    %99 = vector.shape_cast %98 : vector<1xf32> to vector<1x1xf32>
    %100 = tpu.transpose %47, [1, 0] : vector<8x1xf32> -> vector<1x8xf32>
    %cst_32 = arith.constant 1.000000e+00 : f32
    %101 = vector.broadcast %cst_32 : f32 to vector<1x8xf32>
    %102 = arith.subf %101, %100 : vector<1x8xf32>
    %cst_33 = arith.constant 1.000000e+00 : f32
    %103 = vector.broadcast %cst_33 : f32 to vector<1x8xf32>
    %104 = arith.mulf %102, %103 : vector<1x8xf32>
    %cst_34 = arith.constant dense<0.000000e+00> : vector<8x8xf32>
    %105 = tpu.matmul %41, %13, %cst_34 {dimension_numbers = #tpu.dot_dimension_numbers<[1], [1], [0], [0], [0, 0, 1, 0], [], []>} : vector<8x128xf32>, vector<8x128xf32>, vector<8x8xf32> -> vector<8x8xf32>
    %cst_35 = arith.constant 1.000000e+00 : f32
    %106 = vector.broadcast %cst_35 : f32 to vector<8x8xf32>
    %107 = arith.mulf %105, %106 : vector<8x8xf32>
    %108 = vector.broadcast %104 : vector<1x8xf32> to vector<8x8xf32>
    %109 = arith.addf %107, %108 : vector<8x8xf32>
    %cst_36 = arith.constant dense<0.000000e+00> : vector<8x8xf32>
    %110 = tpu.matmul %41, %33, %cst_36 {dimension_numbers = #tpu.dot_dimension_numbers<[1], [1], [0], [0], [0, 0, 1, 0], [], []>} : vector<8x128xf32>, vector<8x128xf32>, vector<8x8xf32> -> vector<8x8xf32>
    %cst_37 = arith.constant 1.000000e+00 : f32
    %111 = vector.broadcast %cst_37 : f32 to vector<8x8xf32>
    %112 = arith.mulf %110, %111 : vector<8x8xf32>
    %113 = vector.broadcast %104 : vector<1x8xf32> to vector<8x8xf32>
    %114 = arith.addf %112, %113 : vector<8x8xf32>
    %cst_38 = arith.constant -1.000000e+30 : f32
    %115 = vector.broadcast %cst_38 : f32 to vector<8x8xf32>
    %116 = arith.select %56, %115, %114 : vector<8x8xi1>, vector<8x8xf32>
    %cst_39 = arith.constant dense<0xFF800000> : vector<8xf32>
    %117 = vector.multi_reduction <maximumf>, %109, %cst_39 [1] : vector<8x8xf32> to vector<8xf32>
    %118 = vector.shape_cast %117 : vector<8xf32> to vector<8x1xf32>
    %cst_40 = arith.constant dense<0xFF800000> : vector<8xf32>
    %119 = vector.multi_reduction <maximumf>, %116, %cst_40 [1] : vector<8x8xf32> to vector<8xf32>
    %120 = vector.shape_cast %119 : vector<8xf32> to vector<8x1xf32>
    %121 = arith.maximumf %118, %120 : vector<8x1xf32>
    %122 = vector.broadcast %121 : vector<8x1xf32> to vector<8x8xf32>
    %123 = arith.subf %109, %122 : vector<8x8xf32>
    %124 = math.exp %123 : vector<8x8xf32>
    %cst_41 = arith.constant dense<0.000000e+00> : vector<8xf32>
    %125 = vector.multi_reduction <add>, %124, %cst_41 [1] : vector<8x8xf32> to vector<8xf32>
    %126 = vector.shape_cast %125 : vector<8xf32> to vector<8x1xf32>
    %127 = vector.broadcast %121 : vector<8x1xf32> to vector<8x8xf32>
    %128 = arith.subf %116, %127 : vector<8x8xf32>
    %129 = math.exp %128 : vector<8x8xf32>
    %cst_42 = arith.constant dense<0.000000e+00> : vector<8xf32>
    %130 = vector.multi_reduction <add>, %129, %cst_42 [1] : vector<8x8xf32> to vector<8xf32>
    %131 = vector.shape_cast %130 : vector<8xf32> to vector<8x1xf32>
    %132 = arith.addf %126, %131 : vector<8x1xf32>
    %133 = math.log %132 : vector<8x1xf32>
    %134 = arith.addf %133, %121 : vector<8x1xf32>
    %135 = arith.subf %53, %47 : vector<8x1xf32>
    %cst_43 = arith.constant 1.000000e+00 : f32
    %136 = vector.broadcast %cst_43 : f32 to vector<8x1xf32>
    %137 = arith.addf %135, %136 : vector<8x1xf32>
    %cst_44 = arith.constant 1.000000e+00 : f32
    %138 = vector.broadcast %cst_44 : f32 to vector<8x1xf32>
    %139 = arith.mulf %137, %138 : vector<8x1xf32>
    %140 = arith.subf %134, %139 : vector<8x1xf32>
    %cst_45 = arith.constant dense<0.000000e+00> : vector<1xf32>
    %141 = vector.multi_reduction <add>, %140, %cst_45 [0] : vector<8x1xf32> to vector<1xf32>
    %142 = vector.shape_cast %141 : vector<1xf32> to vector<1x1xf32>
    %143 = arith.addf %99, %142 : vector<1x1xf32>
    %cst_46 = arith.constant 6.250000e-02 : f32
    %144 = vector.broadcast %cst_46 : f32 to vector<1x1xf32>
    %145 = arith.mulf %143, %144 : vector<1x1xf32>
    %c0_47 = arith.constant 0 : index
    %c0_48 = arith.constant 0 : index
    %146 = vector.load %arg3[%c0_47, %c0_48] : memref<1x1xf32, #tpu.memory_space<vmem>>, vector<1x1xf32>
    tpu.vector_store %arg3[%c0_47, %c0_48], %145 {strides = array<i32>} : memref<1x1xf32, #tpu.memory_space<vmem>>, vector<1x1xf32>,
    return
  }
  func.func @transform_0(%arg0: i32) -> (i32, i32) {
    %c0_i32 = arith.constant 0 : i32
    %c0_i32_0 = arith.constant 0 : i32
    %c0_i32_1 = arith.constant 0 : i32
    return %c0_i32, %c0_i32_0 : i32, i32
  }
  func.func @transform_1(%arg0: i32) -> (i32, i32) {
    %c0_i32 = arith.constant 0 : i32
    %c0_i32_0 = arith.constant 0 : i32
    %c0_i32_1 = arith.constant 0 : i32
    return %c0_i32, %c0_i32_0 : i32, i32
  }
  func.func @transform_2(%arg0: i32) -> (i32, i32) {
    %c0_i32 = arith.constant 0 : i32
    %c0_i32_0 = arith.constant 0 : i32
    %c0_i32_1 = arith.constant 0 : i32
    return %c0_i32, %c0_i32_0 : i32, i32
  }
}

</mosaic_0001>

<bundles_post_ra>
// kernel: tpu_custom_call.1
= control target key start
LH: loop header
LB: loop body
LE: loop exit
PB: predicated region body
PF: predicated region fallthrough
CT: control target
= control target key end

     0   :  { %7 = vsyncpa [#allocation3], 0  ;;  %s506_s0 = inlined_call_operand.hbm [shape: f32[8,128], index: 0, kind: input, shape index: {}]   ;;  %s507_s1 = inlined_call_operand.hbm [shape: f32[8,128], index: 1, kind: input, shape index: {}]   ;;  %s508_s2 = inlined_call_operand.hbm [shape: f32[1,1], index: 2, kind: output, shape index: {}]  }
   0x1   :  { %8 = vsyncpa [#allocation6], 0 }
   0x2   :  { %9 = vsyncpa [#allocation4], 0  ;;  %s15_s11 = sshll.u32 %s506_s0, 4  ;;  %s460_s12 = smov [#allocation2]   ;;  %s16_s11 = int_to_ptr.hbm [resolvable:$true] %s15_s11 }
   0x3   :  { %s17_s13 = sshll.u32 %s460_s12, 4  ;;  %s26_s16 = sshll.u32 %s507_s1, 4  ;;  %s18_s13 = int_to_ptr.vmem [resolvable:$true] %s17_s13  ;;  %s27_s16 = int_to_ptr.hbm [resolvable:$true] %s26_s16 }
   0x4   :  { %20 = dma.hbm_to_vmem [thread:$0]  %s16_s11, 128, %s18_s13, [#allocation3]  }
   0x5   :  { %s461_s17 = smov [#allocation5]  }
   0x6   :  { %s28_s18 = sshll.u32 %s461_s17, 4  ;;  %s29_s18 = int_to_ptr.vmem [resolvable:$true] %s28_s18 }
   0x7   :  { %31 = dma.hbm_to_vmem [thread:$0]  %s27_s16, 128, %s29_s18, [#allocation6]  }
   0x8   :  { %454 = dma.done.wait [#allocation3], 128  }
   0x9   :  { %455 = vsyncadd [#allocation3], 4294967168 }
   0xa   :  { %456 = dma.done.wait [#allocation6], 128  }
   0xb   :  { %457 = vsyncadd [#allocation6], 4294967168  ;;  %v41_v0 = vld [vmem:[#allocation5] sm:$0xff]  ;;  %v40_v1 = vld [vmem:[#allocation2] sm:$0xff]  ;;  %vm192_vm8 = vcmask 64512   ;;  %v112_v60 = vlaneseq  ;;  %s462_s0 = smov [#allocation7]  }
   0xc   :  { %71 = vmax.xlane.f32.xlu0 %v41_v0  ;;  %s341_s1 = sshll.u32 %s462_s0, 4  ;;  %s343_s21 = sshll.u32 %s508_s2, 4  ;;  %vm334_vm10 = vcmask 0   ;;  %s342_s1 = int_to_ptr.vmem [resolvable:$true] %s341_s1  ;;  %s344_s21 = int_to_ptr.hbm [resolvable:$true] %s343_s21 }
  0x14   :  { %42 = vmax.xlane.f32.xlu0 %v40_v1 }
  0x7f   :  { %v72_v2 = vpop.xlane.xlu0 %71 }
  0x80   :  { %v73_v3 = vsub.f32 %v41_v0, %v72_v2  ;;  %v113_v0 = vshrl.u32 %v112_v60, 7 }
  0x82   :  { %v74_v4 = vmul.f32 1.442695, %v73_v3 }
  0x84   :  { %358 = vpow2.f32 %v74_v4 }
  0x87   :  { %v43_v5 = vpop.xlane.xlu0 %42 }
  0x88   :  { %v44_v6 = vsub.f32 %v40_v1, %v43_v5  ;;  %v115_v1 = vand.u32 127, %v112_v60 }
  0x8a   :  { %v359_v7 = vpop.eup %358  ;;  %v45_v8 = vmul.f32 1.442695, %v44_v6  ;;  %vm116_vm9 = vcmp.eq.s32.totalorder %v113_v0, %v115_v1 }
  0x8b   :  { %76 = vadd.xlane.f32.xlu1 %v359_v7 }
  0x8c   :  { %360 = vpow2.f32 %v45_v8 }
  0x92   :  { %v361_v9 = vpop.eup %360 }
  0x93   :  { %47 = vadd.xlane.f32.xlu1 %v361_v9 }
  0xfe   :  { %v77_v10 = vpop.xlane.xlu1 %76 }
  0xff   :  { %362 = vrcp.f32 %v77_v10  ;;  %v93_v17 = vand.u32 2147483648, %v77_v10  ;;  %v91_v19 = vand.u32 2147483647, %v77_v10  ;;  %vm87_vm1 = vweird.f32 %v77_v10 }
 0x100   :  { %364 = vlog2.f32 %v77_v10 }
 0x101   :  { %v94_v24 = vor.u32 1.1754944e-38, %v93_v17  ;;  %vm92_vm3 = vcmp.eq.f32.partialorder %v91_v19, 8.507059e+37 }
 0x105   :  { %v363_v11 = vpop.eup %362 }
 0x106   :  { %v365_v12 = vpop.eup %364  ;;  %v83_v13 = vmul.f32 %v363_v11, %v77_v10  ;;  %v48_v14 = vpop.xlane.xlu1 %47  ;;  %vm88_vm0 = vweird.f32 %v363_v11 }
 0x107   :  { %366 = vrcp.f32 %v48_v14  ;;  %v79_v16 = vmul.f32 0.6931472, %v365_v12  ;;  %vm89_vm2 = vmor %vm87_vm1, %vm88_vm0  ;;  %v64_v32 = vand.u32 2147483648, %v48_v14  ;;  %v62_v35 = vand.u32 2147483647, %v48_v14 }
 0x108   :  { %v84_v15 = vsub.f32 1.0, %v83_v13  ;;  %368 = vlog2.f32 %v48_v14  ;;  %vm58_vm5 = vweird.f32 %v48_v14 }
 0x109   :  { %v80_v20 = vsub.f32 %v73_v3, %v79_v16  ;;  %v65_v40 = vor.u32 1.1754944e-38, %v64_v32  ;;  %vm63_vm7 = vcmp.eq.f32.partialorder %v62_v35, 8.507059e+37 }
 0x10a   :  { %v85_v18 = vmul.f32 %v363_v11, %v84_v15 }
 0x10b   :  { %v81_v21 = vmax.f32 %v80_v20, -16.118095 }
 0x10c   :  { %v86_v22 = vadd.f32 %v363_v11, %v85_v18 }
 0x10d   :  { %v367_v23 = vpop.eup %366  ;;  %166 = vmatpush.xpose.msra.mxu0 %v81_v21  ;;  %294 = vmatpush.xpose.msra.mxu3 %v81_v21 }
 0x10e   :  { %v369_v25 = vpop.eup %368  ;;  %v54_v26 = vmul.f32 %v367_v23, %v48_v14  ;;  %v90_v27 = vsel %vm89_vm2, %v363_v11, %v86_v22  ;;  %vm59_vm4 = vweird.f32 %v367_v23 }
 0x10f   :  { %v50_v28 = vmul.f32 0.6931472, %v369_v25  ;;  %v95_v29 = vsel %vm92_vm3, %v94_v24, %v90_v27  ;;  %vm60_vm6 = vmor %vm58_vm5, %vm59_vm4 }
 0x110   :  { %v55_v30 = vsub.f32 1.0, %v54_v26  ;;  %v97_v31 = vmul.f32 %v359_v7, %v95_v29 }
 0x111   :  { %v51_v33 = vsub.f32 %v44_v6, %v50_v28 }
 0x112   :  { %v56_v34 = vmul.f32 %v367_v23, %v55_v30  ;;  %v98_v36 = vmax.f32 %v97_v31, 1e-07 }
 0x113   :  { %v52_v37 = vmax.f32 %v51_v33, -16.118095 }
 0x114   :  { %v99_v38 = vmin.f32 %v98_v36, 1.0  ;;  %v57_v39 = vadd.f32 %v367_v23, %v56_v34 }
 0x115   :  { %186 = vmatpush.xpose.msra.mxu1 %v52_v37  ;;  %274 = vmatpush.xpose.msra.mxu2 %v52_v37 }
 0x116   :  { %295 = vmatmul.f32.vlgmr.msra.gmra.mxu3 %v99_v38  ;;  %v61_v41 = vsel %vm60_vm6, %v367_v23, %v57_v39  ;;  %v109_v42 = vmul.f32 %v99_v38, %v52_v37  ;;  %v103_v49 = vmul.f32 %v99_v38, %v81_v21 }
 0x117   :  { %v66_v43 = vsel %vm63_vm7, %v65_v40, %v61_v41 }
 0x118   :  { %275 = vmatmul.f32.vlgmr.msra.gmra.mxu2 %v99_v38  ;;  %v68_v44 = vmul.f32 %v361_v9, %v66_v43 }
 0x11a   :  { %v69_v45 = vmax.f32 %v68_v44, 1e-07 }
 0x11c   :  { %v70_v46 = vmin.f32 %v69_v45, 1.0 }
 0x11e   :  { %167 = vmatmul.f32.vlgmr.msra.gmra.mxu0 %v70_v46  ;;  %187 = vmatmul.f32.vlgmr.msra.gmra.mxu1 %v70_v46  ;;  %v100_v47 = vmul.f32 %v70_v46, %v52_v37  ;;  %v484_v48 = vmul.f32 %v81_v21, %v70_v46 }
 0x120   :  { %101 = vadd.xlane.f32.xlu2 %v100_v47 }
 0x128   :  { %104 = vadd.xlane.f32.xlu2 %v103_v49 }
 0x193   :  { %v486_v50 = vpop.xlane.xlu2 %101 }
 0x194   :  { %117 = vxpose.xlu0.b32.start.end [1/1] (short) (narrow) %v486_v50, 8 }
 0x199   :  { %v296_v6 = vpop.f32.mrf.mxu3 }
 0x19b   :  { %v489_v51 = vpop.xlane.xlu2 %104  ;;  %v168_v55 = vpop.f32.mrf.mxu0 }
 0x19c   :  { %225 = vxpose.xlu1.b32.start.end [1/1] (short) (narrow) %v489_v51, 8  ;;  %v276_v62 = vpop.f32.mrf.mxu2  ;;  %v188_v2 = vpop.f32.mrf.mxu1 }
 0x1fc   :  { %110 = vadd.xlane.f32.xlu1 %v109_v42 }
 0x238   :  { %v133_v52 = vpop.trf.xlu0 }
 0x239   :  { %v149_v53 = vsub.f32 1.0, %v133_v52 }
 0x23b   :  { %v150_v54 = vperm.slane %v149_v53, 0 }
 0x23d   :  { %v169_v56 = vadd.f32 %v168_v55, %v150_v54  ;;  %v189_v4 = vadd.f32 %v188_v2, %v150_v54 }
 0x23f   :  { %v193_v57 = vsel %vm192_vm8, %v169_v56, -inf  ;;  %v191_v5 = vsel %vm116_vm9, -1e+30, %v189_v4 }
 0x240   :  { %194 = vmax.xlane.f32.xlu2 %v193_v57  ;;  %v241_v58 = vpop.trf.xlu1  ;;  %v196_v7 = vsel %vm192_vm8, %v191_v5, -inf }
 0x241   :  { %v257_v59 = vsub.f32 1.0, %v241_v58 }
 0x243   :  { %v258_v61 = vperm.slane %v257_v59, 0 }
 0x245   :  { %v277_v63 = vadd.f32 %v276_v62, %v258_v61  ;;  %v297_v8 = vadd.f32 %v296_v6, %v258_v61 }
 0x247   :  { %v300_v3 = vsel %vm192_vm8, %v277_v63, -inf  ;;  %v299_v9 = vsel %vm116_vm9, -1e+30, %v297_v8 }
 0x248   :  { %301 = vmax.xlane.f32.xlu2 %v300_v3  ;;  %v303_v10 = vsel %vm192_vm8, %v299_v9, -inf }
 0x250   :  { %197 = vmax.xlane.f32.xlu2 %v196_v7 }
 0x258   :  { %304 = vmax.xlane.f32.xlu2 %v303_v10 }
 0x26f   :  { %v111_v40 = vpop.xlane.xlu1 %110 }
 0x270   :  { %v323_v42 = vsub.f32 %v111_v40, %v489_v51 }
 0x272   :  { %v324_v49 = vadd.f32 1.0, %v323_v42 }
 0x2b3   :  { %v195_v11 = vpop.xlane.xlu2 %194 }
 0x2bb   :  { %v302_v12 = vpop.xlane.xlu2 %301 }
 0x2c3   :  { %v198_v13 = vpop.xlane.xlu2 %197 }
 0x2c4   :  { %v199_v14 = vmax.f32 %v195_v11, %v198_v13 }
 0x2c6   :  { %v200_v15 = vsub.f32 %v169_v56, %v199_v14  ;;  %v206_v17 = vsub.f32 %v191_v5, %v199_v14 }
 0x2c8   :  { %v201_v16 = vmul.f32 1.442695, %v200_v15  ;;  %v207_v19 = vmul.f32 1.442695, %v206_v17 }
 0x2ca   :  { %370 = vpow2.f32 %v201_v16 }
 0x2cb   :  { %v305_v18 = vpop.xlane.xlu2 %304  ;;  %372 = vpow2.f32 %v207_v19 }
 0x2cc   :  { %v306_v20 = vmax.f32 %v302_v12, %v305_v18 }
 0x2ce   :  { %v307_v21 = vsub.f32 %v277_v63, %v306_v20  ;;  %v313_v24 = vsub.f32 %v299_v9, %v306_v20 }
 0x2d0   :  { %v371_v22 = vpop.eup %370  ;;  %v308_v23 = vmul.f32 1.442695, %v307_v21  ;;  %v314_v26 = vmul.f32 1.442695, %v313_v24 }
 0x2d1   :  { %v203_v25 = vsel %vm192_vm8, %v371_v22, 0.0  ;;  %v373_v27 = vpop.eup %372 }
 0x2d2   :  { %374 = vpow2.f32 %v308_v23  ;;  %204 = vadd.xlane.f32.xlu2 %v203_v25  ;;  %v209_v29 = vsel %vm192_vm8, %v373_v27, 0.0 }
 0x2d3   :  { %376 = vpow2.f32 %v314_v26 }
 0x2d8   :  { %v375_v28 = vpop.eup %374 }
 0x2d9   :  { %v310_v30 = vsel %vm192_vm8, %v375_v28, 0.0  ;;  %v377_v31 = vpop.eup %376 }
 0x2da   :  { %210 = vadd.xlane.f32.xlu2 %v209_v29  ;;  %311 = vadd.xlane.f32.xlu0 %v310_v30  ;;  %v316_v32 = vsel %vm192_vm8, %v377_v31, 0.0 }
 0x2e2   :  { %317 = vadd.xlane.f32.xlu2 %v316_v32 }
 0x2ea   :  { %107 = vadd.xlane.f32.xlu2 %v484_v48 }
 0x345   :  { %v205_v33 = vpop.xlane.xlu2 %204 }
 0x34d   :  { %v211_v34 = vpop.xlane.xlu2 %210  ;;  %v312_v36 = vpop.xlane.xlu0 %311 }
 0x34e   :  { %v212_v35 = vadd.f32 %v211_v34, %v205_v33 }
 0x350   :  { %378 = vlog2.f32 %v212_v35 }
 0x355   :  { %v318_v37 = vpop.xlane.xlu2 %317 }
 0x356   :  { %v319_v38 = vadd.f32 %v318_v37, %v312_v36  ;;  %v379_v39 = vpop.eup %378 }
 0x357   :  { %v214_v41 = vmul.f32 0.6931472, %v379_v39 }
 0x358   :  { %380 = vlog2.f32 %v319_v38 }
 0x359   :  { %v215_v47 = vadd.f32 %v214_v41, %v199_v14 }
 0x35d   :  { %v108_v43 = vpop.xlane.xlu2 %107 }
 0x35e   :  { %v381_v44 = vpop.eup %380  ;;  %v216_v45 = vsub.f32 %v108_v43, %v486_v50 }
 0x35f   :  { %v321_v46 = vmul.f32 0.6931472, %v381_v44 }
 0x360   :  { %v217_v48 = vadd.f32 1.0, %v216_v45 }
 0x361   :  { %v322_v52 = vadd.f32 %v321_v46, %v306_v20 }
 0x362   :  { %v218_v53 = vsub.f32 %v215_v47, %v217_v48 }
 0x363   :  { %v325_v54 = vsub.f32 %v322_v52, %v324_v49 }
 0x364   :  { %v219_v55 = vrot.slane %v218_v53, 4 }
 0x365   :  { %v326_v56 = vrot.slane %v325_v54, 4 }
 0x366   :  { %v220_v57 = vadd.f32 %v219_v55, %v218_v53 }
 0x367   :  { %v327_v58 = vadd.f32 %v326_v56, %v325_v54 }
 0x368   :  { %v221_v59 = vrot.slane %v220_v57, 2 }
 0x369   :  { %v328_v60 = vrot.slane %v327_v58, 2 }
 0x36a   :  { %v222_v61 = vadd.f32 %v221_v59, %v220_v57 }
 0x36b   :  { %v329_v62 = vadd.f32 %v328_v60, %v327_v58 }
 0x36c   :  { %v223_v51 = vrot.slane %v222_v61, 1 }
 0x36d   :  { %v330_v63 = vrot.slane %v329_v62, 1 }
 0x36e   :  { %v224_v0 = vadd.f32 %v223_v51, %v222_v61 }
 0x36f   :  { %v331_v1 = vadd.f32 %v330_v63, %v329_v62 }
 0x371   :  { %v332_v50 = vadd.f32 %v331_v1, %v224_v0 }
 0x373   :  { %v333_v2 = vmul.f32 0.0625, %v332_v50 }
 0x375   :  { %335 = vst.msk [vmem:[#allocation7] sm:$0x1] %vm334_vm10, %v333_v2 }
 0x376   :  { %346 = dma.vmem_to_hbm [thread:$0]  %s342_s1, 16, %s344_s21, [#allocation4]  }
 0x377   :  { %458 = dma.done.wait [#allocation4], 16  }
 0x378   :  { %459 = vsyncadd [#allocation4], 4294967280 }
 0x379   :  { %351 = vsyncpa [#allocation3], 1 }
 0x37a   :  { %352 = vsyncpa [#allocation6], 1 }
 0x37b   :  { %353 = vsyncpa [#allocation4], 1 }

</bundles_post_ra>
